<compile_context>
chip_gen: v7x
topology: tpu7x:2x2x1
jax: 0.10.0
libtpu: 0.0.40
codegen_flags: <defaults>
</compile_context>

<pallas_src>
import math

import jax
import jax.numpy as jnp
from jax.experimental import pallas as pl
from jax.experimental.pallas import tpu as pltpu


def _round_up(n, m):
    return ((n + m - 1) // m) * m


def _make_mlp_kernel(vpu_layer1: bool):
    """Build the fused 4-layer MLP kernel.

    vpu_layer1: when True, layer 1 (tiny contraction depth, e.g. K=2) is
    computed as broadcast FMAs on the VPU instead of MXU pushes.
    """

    def kernel(x_ref,
               w1_ref, b1_ref,
               w2_ref, b2_ref,
               w3_ref, b3_ref,
               w4_ref, b4_ref,
               o_ref):
        x = x_ref[...]                       # (TB, in_dim) f32
        b1 = b1_ref[...]                     # (1, H) f32

        if vpu_layer1:
            # K is tiny (e.g. 2): broadcast FMAs on the VPU, MXU stays free.
            # Bias is fused into the first FMA (one fewer vector add).
            w1 = w1_ref[...]                 # (in_dim, H)
            h = x[:, 0:1] * w1[0:1, :] + b1
            for k in range(1, x.shape[1]):   # static tiny loop (in_dim <= 8)
                h = h + x[:, k:k + 1] * w1[k:k + 1, :]
            h = jnp.maximum(h, 0.0)
        else:
            h = jnp.dot(x, w1_ref[...], preferred_element_type=jnp.float32)
            h = jnp.maximum(h + b1, 0.0)

        def dense_relu(h, w_ref, b_ref):
            lhs = h.astype(w_ref.dtype) if w_ref.dtype != jnp.float32 else h
            y = jnp.dot(lhs, w_ref[...], preferred_element_type=jnp.float32)
            return jnp.maximum(y + b_ref[...], 0.0)

        h = dense_relu(h, w2_ref, b2_ref)    # (TB, 2H)
        h = dense_relu(h, w3_ref, b3_ref)    # (TB, H)

        lhs = h.astype(w4_ref.dtype) if w4_ref.dtype != jnp.float32 else h
        logits = jnp.dot(lhs, w4_ref[...], preferred_element_type=jnp.float32)
        logits = logits + b4_ref[...]
        # sigmoid lowers to EUP (free slot next to the MXU/VPU work).
        o_ref[...] = 2.0 * jax.nn.sigmoid(logits)   # (TB, N_pad) lane-dense store

    return kernel


def mlp_error_est_forward(x, params, *, batch_tile=256, use_bf16=False,
                          vmem_limit_bytes=48 * 1024 * 1024):
    """Forward pass of MLP_error_est.

    x: (B, input_size) float32.
    params: dict with w{i}: (in, out), b{i}: (1, out) for i=1..4, float32.
    batch_tile: rows per grid step (rounded to a multiple of 8, clamped to B).
    use_bf16: cast layer-2/3/4 weights + activations to bf16 (f32 accumulation).
    """
    B, in_dim = x.shape
    w1, b1 = params["w1"], params["b1"]
    w2, b2 = params["w2"], params["b2"]
    w3, b3 = params["w3"], params["b3"]
    w4, b4 = params["w4"], params["b4"]
    num_classes = w4.shape[1]

    # Lane-dense output: pad the final N dim to a multiple of 128 so per-step
    # stores are unmasked full-lane vst; sliced back in the wrapper.
    n_pad = _round_up(num_classes, 128)
    if n_pad != num_classes:
        w4p = jnp.pad(w4, ((0, 0), (0, n_pad - num_classes)))
        b4p = jnp.pad(b4, ((0, 0), (0, n_pad - num_classes)))
    else:
        w4p, b4p = w4, b4

    # Optional bf16 operands for the big matmuls (accumulation stays f32).
    if use_bf16:
        w2 = w2.astype(jnp.bfloat16)
        w3 = w3.astype(jnp.bfloat16)
        w4p = w4p.astype(jnp.bfloat16)

    # Batch tiling: big tiles fill MXU rows and amortize per-step overhead
    # (~0.35 us/step); keep >= 2 grid steps when possible so v7x shards the
    # parallel axis across both TensorCores.
    tb = _round_up(max(8, min(batch_tile, B)), 8)
    n_tiles = pl.cdiv(B, tb)
    if n_tiles == 1 and B > 8:
        tb = _round_up(pl.cdiv(B, 2), 8)
        n_tiles = pl.cdiv(B, tb)
    b_pad = n_tiles * tb
    xp = jnp.pad(x, ((0, b_pad - B), (0, 0))) if b_pad != B else x

    vpu_layer1 = in_dim <= 8   # contraction too shallow to be worth the MXU

    # Advisory cost estimate for XLA's scheduler around the custom call.
    h1, h2, h3 = w1.shape[1], w2.shape[1], w3.shape[1]
    flops = 2 * B * (in_dim * h1 + h1 * h2 + h2 * h3 + h3 * num_classes)
    param_bytes = sum(int(a.size) * a.dtype.itemsize
                      for a in (w1, b1, w2, b2, w3, b3, w4p, b4p))
    cost = pl.CostEstimate(
        flops=flops,
        transcendentals=B * num_classes,
        bytes_accessed=int(x.size) * 4 + param_bytes + b_pad * n_pad * 4,
    )

    def full(arr):
        # Grid-invariant operand: one block covering the whole array; constant
        # index_map -> fetched once, stays resident across grid steps.
        return pl.BlockSpec(arr.shape, lambda i: (0, 0))

    out = pl.pallas_call(
        _make_mlp_kernel(vpu_layer1),
        out_shape=jax.ShapeDtypeStruct((b_pad, n_pad), jnp.float32),
        grid_spec=pltpu.PrefetchScalarGridSpec(
            num_scalar_prefetch=0,
            grid=(n_tiles,),
            in_specs=[
                pl.BlockSpec((tb, in_dim), lambda i: (i, 0)),
                full(w1), full(b1),
                full(w2), full(b2),
                full(w3), full(b3),
                full(w4p), full(b4p),
            ],
            out_specs=pl.BlockSpec((tb, n_pad), lambda i: (i, 0)),
        ),
        compiler_params=pltpu.CompilerParams(
            dimension_semantics=("parallel",),
            vmem_limit_bytes=vmem_limit_bytes,
        ),
        cost_estimate=cost,
    )(xp, w1, b1, w2, b2, w3, b3, w4p, b4p)

    return out[:B, :num_classes]


def init_params(key, input_size=2, middle_layer_size=512, num_classes=1):
    """Deterministic init mimicking nn.Linear defaults (uniform(+-1/sqrt(fan_in)))."""
    dims = [
        (input_size, middle_layer_size),
        (middle_layer_size, middle_layer_size * 2),
        (middle_layer_size * 2, middle_layer_size),
        (middle_layer_size, num_classes),
    ]
    params = {}
    for idx, (fan_in, fan_out) in enumerate(dims, start=1):
        key, kw, kb = jax.random.split(key, 3)
        bound = 1.0 / math.sqrt(fan_in)
        params[f"w{idx}"] = jax.random.uniform(
            kw, (fan_in, fan_out), jnp.float32, -bound, bound)
        params[f"b{idx}"] = jax.random.uniform(
            kb, (1, fan_out), jnp.float32, -bound, bound)
    return params


def reference_forward(x, params):
    h = jnp.maximum(x @ params["w1"] + params["b1"], 0.0)
    h = jnp.maximum(h @ params["w2"] + params["b2"], 0.0)
    h = jnp.maximum(h @ params["w3"] + params["b3"], 0.0)
    return 2.0 * jax.nn.sigmoid(h @ params["w4"] + params["b4"])


if __name__ == "__main__":
    key = jax.random.PRNGKey(0)

    # Small shapes consistent with the module: input_size=2, num_classes=1,
    # middle_layer_size shrunk to 128 (layers: 2 -> 128 -> 256 -> 128 -> 1).
    INPUT_SIZE, MIDDLE, NUM_CLASSES = 2, 128, 1
    key, kp = jax.random.split(key)
    params = init_params(kp, INPUT_SIZE, MIDDLE, NUM_CLASSES)

    # Case 1: tiny batch (single grid step, tile clamped to 8 rows).
    key, kx = jax.random.split(key)
    x_small = jax.random.normal(kx, (8, INPUT_SIZE), jnp.float32)
    out_small = jax.block_until_ready(mlp_error_est_forward(x_small, params))
    ref_small = reference_forward(x_small, params)
    assert out_small.shape == (8, NUM_CLASSES)
    assert jnp.allclose(out_small, ref_small, atol=1e-5, rtol=1e-5), "small-batch mismatch"

    # Case 2: ragged batch exercising row padding and >=2 parallel grid steps.
    key, kx = jax.random.split(key)
    x_big = jax.random.normal(kx, (200, INPUT_SIZE), jnp.float32)
    out_big = jax.block_until_ready(
        mlp_error_est_forward(x_big, params, batch_tile=256))
    ref_big = reference_forward(x_big, params)
    assert out_big.shape == (200, NUM_CLASSES)
    assert jnp.allclose(out_big, ref_big, atol=1e-5, rtol=1e-5), "big-batch mismatch"

    # Case 3: bf16 operands / f32 accumulation path (loose tolerance).
    out_bf16 = jax.block_until_ready(
        mlp_error_est_forward(x_big, params, batch_tile=128, use_bf16=True))
    assert out_bf16.shape == (200, NUM_CLASSES)
    assert jnp.allclose(out_bf16, ref_big, atol=1.5e-1, rtol=1e-1), "bf16 path mismatch"

    print("KERNEL_OK")
</pallas_src>

<mosaic_0001>
module attributes {stable_mosaic.version = 11 : i64} {
  func.func @kernel(%arg0: i32, %arg1: memref<8x2xf32, #tpu.memory_space<vmem>>, %arg2: memref<2x128xf32, #tpu.memory_space<vmem>>, %arg3: memref<1x128xf32, #tpu.memory_space<vmem>>, %arg4: memref<128x256xf32, #tpu.memory_space<vmem>>, %arg5: memref<1x256xf32, #tpu.memory_space<vmem>>, %arg6: memref<256x128xf32, #tpu.memory_space<vmem>>, %arg7: memref<1x128xf32, #tpu.memory_space<vmem>>, %arg8: memref<128x128xf32, #tpu.memory_space<vmem>>, %arg9: memref<1x128xf32, #tpu.memory_space<vmem>>, %arg10: memref<8x128xf32, #tpu.memory_space<vmem>>) attributes {dimension_semantics = [#tpu.dimension_semantics<parallel>], iteration_bounds = array<i64: 1>, scalar_prefetch = 0 : i64, scratch_operands = 0 : i64, tpu.core_type = #tpu.core_type<tc>, window_params = [{transform_indices = @transform_0, window_bounds = array<i64: 8, 2>}, {pipeline_mode = #tpu.pipeline_mode<synchronous>, transform_indices = @transform_1, window_bounds = array<i64: 2, 128>}, {pipeline_mode = #tpu.pipeline_mode<synchronous>, transform_indices = @transform_2, window_bounds = array<i64: 1, 128>}, {pipeline_mode = #tpu.pipeline_mode<synchronous>, transform_indices = @transform_3, window_bounds = array<i64: 128, 256>}, {pipeline_mode = #tpu.pipeline_mode<synchronous>, transform_indices = @transform_4, window_bounds = array<i64: 1, 256>}, {pipeline_mode = #tpu.pipeline_mode<synchronous>, transform_indices = @transform_5, window_bounds = array<i64: 256, 128>}, {pipeline_mode = #tpu.pipeline_mode<synchronous>, transform_indices = @transform_6, window_bounds = array<i64: 1, 128>}, {pipeline_mode = #tpu.pipeline_mode<synchronous>, transform_indices = @transform_7, window_bounds = array<i64: 128, 128>}, {pipeline_mode = #tpu.pipeline_mode<synchronous>, transform_indices = @transform_8, window_bounds = array<i64: 1, 128>}, {transform_indices = @transform_9, window_bounds = array<i64: 8, 128>}]} {
    %c0 = arith.constant 0 : index
    %c0_0 = arith.constant 0 : index
    %0 = vector.load %arg1[%c0, %c0_0] : memref<8x2xf32, #tpu.memory_space<vmem>>, vector<8x2xf32>
    %c0_1 = arith.constant 0 : index
    %c0_2 = arith.constant 0 : index
    %1 = vector.load %arg3[%c0_1, %c0_2] : memref<1x128xf32, #tpu.memory_space<vmem>>, vector<1x128xf32>
    %c0_3 = arith.constant 0 : index
    %c0_4 = arith.constant 0 : index
    %2 = vector.load %arg2[%c0_3, %c0_4] : memref<2x128xf32, #tpu.memory_space<vmem>>, vector<2x128xf32>
    %3 = vector.extract_strided_slice %0 {offsets = [0, 0], sizes = [8, 1], strides = [1, 1]} : vector<8x2xf32> to vector<8x1xf32>
    %4 = vector.extract_strided_slice %2 {offsets = [0, 0], sizes = [1, 128], strides = [1, 1]} : vector<2x128xf32> to vector<1x128xf32>
    %5 = vector.broadcast %3 : vector<8x1xf32> to vector<8x128xf32>
    %6 = vector.broadcast %4 : vector<1x128xf32> to vector<8x128xf32>
    %7 = arith.mulf %5, %6 : vector<8x128xf32>
    %8 = vector.broadcast %1 : vector<1x128xf32> to vector<8x128xf32>
    %9 = arith.addf %7, %8 : vector<8x128xf32>
    %10 = vector.extract_strided_slice %0 {offsets = [0, 1], sizes = [8, 1], strides = [1, 1]} : vector<8x2xf32> to vector<8x1xf32>
    %11 = vector.extract_strided_slice %2 {offsets = [1, 0], sizes = [1, 128], strides = [1, 1]} : vector<2x128xf32> to vector<1x128xf32>
    %12 = vector.broadcast %10 : vector<8x1xf32> to vector<8x128xf32>
    %13 = vector.broadcast %11 : vector<1x128xf32> to vector<8x128xf32>
    %14 = arith.mulf %12, %13 : vector<8x128xf32>
    %15 = arith.addf %9, %14 : vector<8x128xf32>
    %cst = arith.constant 0.000000e+00 : f32
    %16 = vector.broadcast %cst : f32 to vector<8x128xf32>
    %17 = arith.maximumf %15, %16 : vector<8x128xf32>
    %c0_5 = arith.constant 0 : index
    %c0_6 = arith.constant 0 : index
    %18 = vector.load %arg4[%c0_5, %c0_6] : memref<128x256xf32, #tpu.memory_space<vmem>>, vector<128x256xf32>
    %cst_7 = arith.constant dense<0.000000e+00> : vector<8x256xf32>
    %19 = tpu.matmul %17, %18, %cst_7 {dimension_numbers = #tpu.dot_dimension_numbers<[1], [0], [0], [1], [0, 0, 1, 1], [], []>} : vector<8x128xf32>, vector<128x256xf32>, vector<8x256xf32> -> vector<8x256xf32>
    %c0_8 = arith.constant 0 : index
    %c0_9 = arith.constant 0 : index
    %20 = vector.load %arg5[%c0_8, %c0_9] : memref<1x256xf32, #tpu.memory_space<vmem>>, vector<1x256xf32>
    %21 = vector.broadcast %20 : vector<1x256xf32> to vector<8x256xf32>
    %22 = arith.addf %19, %21 : vector<8x256xf32>
    %cst_10 = arith.constant 0.000000e+00 : f32
    %23 = vector.broadcast %cst_10 : f32 to vector<8x256xf32>
    %24 = arith.maximumf %22, %23 : vector<8x256xf32>
    %c0_11 = arith.constant 0 : index
    %c0_12 = arith.constant 0 : index
    %25 = vector.load %arg6[%c0_11, %c0_12] : memref<256x128xf32, #tpu.memory_space<vmem>>, vector<256x128xf32>
    %cst_13 = arith.constant dense<0.000000e+00> : vector<8x128xf32>
    %26 = tpu.matmul %24, %25, %cst_13 {dimension_numbers = #tpu.dot_dimension_numbers<[1], [0], [0], [1], [0, 0, 1, 1], [], []>} : vector<8x256xf32>, vector<256x128xf32>, vector<8x128xf32> -> vector<8x128xf32>
    %c0_14 = arith.constant 0 : index
    %c0_15 = arith.constant 0 : index
    %27 = vector.load %arg7[%c0_14, %c0_15] : memref<1x128xf32, #tpu.memory_space<vmem>>, vector<1x128xf32>
    %28 = vector.broadcast %27 : vector<1x128xf32> to vector<8x128xf32>
    %29 = arith.addf %26, %28 : vector<8x128xf32>
    %cst_16 = arith.constant 0.000000e+00 : f32
    %30 = vector.broadcast %cst_16 : f32 to vector<8x128xf32>
    %31 = arith.maximumf %29, %30 : vector<8x128xf32>
    %c0_17 = arith.constant 0 : index
    %c0_18 = arith.constant 0 : index
    %32 = vector.load %arg8[%c0_17, %c0_18] : memref<128x128xf32, #tpu.memory_space<vmem>>, vector<128x128xf32>
    %cst_19 = arith.constant dense<0.000000e+00> : vector<8x128xf32>
    %33 = tpu.matmul %31, %32, %cst_19 {dimension_numbers = #tpu.dot_dimension_numbers<[1], [0], [0], [1], [0, 0, 1, 1], [], []>} : vector<8x128xf32>, vector<128x128xf32>, vector<8x128xf32> -> vector<8x128xf32>
    %c0_20 = arith.constant 0 : index
    %c0_21 = arith.constant 0 : index
    %34 = vector.load %arg9[%c0_20, %c0_21] : memref<1x128xf32, #tpu.memory_space<vmem>>, vector<1x128xf32>
    %35 = vector.broadcast %34 : vector<1x128xf32> to vector<8x128xf32>
    %36 = arith.addf %33, %35 : vector<8x128xf32>
    %37 = arith.negf %36 : vector<8x128xf32>
    %38 = math.exp %37 : vector<8x128xf32>
    %cst_22 = arith.constant 1.000000e+00 : f32
    %39 = vector.broadcast %cst_22 : f32 to vector<8x128xf32>
    %40 = arith.addf %39, %38 : vector<8x128xf32>
    %41 = arith.divf %39, %40 : vector<8x128xf32>
    %cst_23 = arith.constant 2.000000e+00 : f32
    %42 = vector.broadcast %cst_23 : f32 to vector<8x128xf32>
    %43 = arith.mulf %42, %41 : vector<8x128xf32>
    %c0_24 = arith.constant 0 : index
    %c0_25 = arith.constant 0 : index
    %44 = vector.load %arg10[%c0_24, %c0_25] : memref<8x128xf32, #tpu.memory_space<vmem>>, vector<8x128xf32>
    tpu.vector_store %arg10[%c0_24, %c0_25], %43 {strides = array<i32>} : memref<8x128xf32, #tpu.memory_space<vmem>>, vector<8x128xf32>,
    return
  }
  func.func @transform_0(%arg0: i32) -> (i32, i32) {
    %c0_i32 = arith.constant 0 : i32
    %c0_i32_0 = arith.constant 0 : i32
    return %arg0, %c0_i32 : i32, i32
  }
  func.func @transform_1(%arg0: i32) -> (i32, i32) {
    %c0_i32 = arith.constant 0 : i32
    %c0_i32_0 = arith.constant 0 : i32
    %c0_i32_1 = arith.constant 0 : i32
    return %c0_i32, %c0_i32_0 : i32, i32
  }
  func.func @transform_2(%arg0: i32) -> (i32, i32) {
    %c0_i32 = arith.constant 0 : i32
    %c0_i32_0 = arith.constant 0 : i32
    %c0_i32_1 = arith.constant 0 : i32
    return %c0_i32, %c0_i32_0 : i32, i32
  }
  func.func @transform_3(%arg0: i32) -> (i32, i32) {
    %c0_i32 = arith.constant 0 : i32
    %c0_i32_0 = arith.constant 0 : i32
    %c0_i32_1 = arith.constant 0 : i32
    return %c0_i32, %c0_i32_0 : i32, i32
  }
  func.func @transform_4(%arg0: i32) -> (i32, i32) {
    %c0_i32 = arith.constant 0 : i32
    %c0_i32_0 = arith.constant 0 : i32
    %c0_i32_1 = arith.constant 0 : i32
    return %c0_i32, %c0_i32_0 : i32, i32
  }
  func.func @transform_5(%arg0: i32) -> (i32, i32) {
    %c0_i32 = arith.constant 0 : i32
    %c0_i32_0 = arith.constant 0 : i32
    %c0_i32_1 = arith.constant 0 : i32
    return %c0_i32, %c0_i32_0 : i32, i32
  }
  func.func @transform_6(%arg0: i32) -> (i32, i32) {
    %c0_i32 = arith.constant 0 : i32
    %c0_i32_0 = arith.constant 0 : i32
    %c0_i32_1 = arith.constant 0 : i32
    return %c0_i32, %c0_i32_0 : i32, i32
  }
  func.func @transform_7(%arg0: i32) -> (i32, i32) {
    %c0_i32 = arith.constant 0 : i32
    %c0_i32_0 = arith.constant 0 : i32
    %c0_i32_1 = arith.constant 0 : i32
    return %c0_i32, %c0_i32_0 : i32, i32
  }
  func.func @transform_8(%arg0: i32) -> (i32, i32) {
    %c0_i32 = arith.constant 0 : i32
    %c0_i32_0 = arith.constant 0 : i32
    %c0_i32_1 = arith.constant 0 : i32
    return %c0_i32, %c0_i32_0 : i32, i32
  }
  func.func @transform_9(%arg0: i32) -> (i32, i32) {
    %c0_i32 = arith.constant 0 : i32
    %c0_i32_0 = arith.constant 0 : i32
    return %arg0, %c0_i32 : i32, i32
  }
}

</mosaic_0001>

<bundles_post_ra>
// kernel: tpu_custom_call.1
= control target key start
LH: loop header
LB: loop body
LE: loop exit
PB: predicated region body
PF: predicated region fallthrough
CT: control target
= control target key end

     0   :  { %14 = vsyncpa [#allocation3], 0  ;;  %s878_s0 = inlined_call_operand.vmem [shape: f32[8,2], index: 0, kind: input, shape index: {}]   ;;  %s879_s1 = inlined_call_operand.vmem [shape: f32[2,128], index: 1, kind: input, shape index: {}]   ;;  %s880_s2 = inlined_call_operand.vmem [shape: f32[1,128], index: 2, kind: input, shape index: {}]   ;;  %s881_s3 = inlined_call_operand.hbm [shape: f32[128,256], index: 3, kind: input, shape index: {}]   ;;  %s882_s4 = inlined_call_operand.vmem [shape: f32[1,256], index: 4, kind: input, shape index: {}]   ;;  %s883_s5 = inlined_call_operand.hbm [shape: f32[256,128], index: 5, kind: input, shape index: {}]   ;;  %s884_s6 = inlined_call_operand.vmem [shape: f32[1,128], index: 6, kind: input, shape index: {}]   ;;  %s885_s7 = inlined_call_operand.hbm [shape: f32[128,128], index: 7, kind: input, shape index: {}]   ;;  %s886_s8 = inlined_call_operand.vmem [shape: f32[1,128], index: 8, kind: input, shape index: {}]   ;;  %s887_s9 = inlined_call_operand.hbm [shape: f32[8,128], index: 9, kind: output, shape index: {}]  }
   0x1   :  { %15 = vsyncpa [#allocation6], 0 }
   0x2   :  { %16 = vsyncpa [#allocation4], 0  ;;  %s741_s30 = smov [#allocation5]   ;;  %s647_s13 = scalar_lea.hbm %s883_s5, 4096 }
   0x3   :  { %s42_s10 = sshll.u32 %s741_s30, 4  ;;  %p648_p0 = scmp.ne.s32.totalorder %s883_s5, %s647_s13  ;;  %s43_s10 = int_to_ptr.vmem [resolvable:$true] %s42_s10 }
   0x4   :  { %p651_p1 = scmp.lt.u32.totalorder %s647_s13, %s883_s5 }
   0x6   :  { %p653_p2 = pnand %p651_p1, %p648_p0 }
   0x8   :  { %656 = shalt.err (!%p653_p2)
}
   0x9   :  { %s657_s18 = scalar_lea.vmem %s43_s10, 4096  ;;  %p662_p4 = scmp.lt.s32.totalorder %s43_s10, %s43_s10 }
   0xa   :  { %p658_p3 = scmp.ne.s32.totalorder %s43_s10, %s657_s18  ;;  %p663_p5 = scmp.lt.s32.totalorder %s657_s18, %s657_s18 }
   0xc   :  { %p664_p6 = por %p663_p5, %p662_p4 }
   0xe   :  { %p665_p7 = pnand %p664_p6, %p658_p3 }
  0x10   :  { %668 = shalt.err (!%p665_p7)
}
  0x11   :  { %s742_s19 = smov 128   ;;  %s743_s20 = smov 8  }
  0x12   :  { %48 = dma.hbm_to_vmem [thread:$0]  %s883_s5, 4096, %s43_s10, [#allocation6], %s742_s19, %s742_s19, %s743_s20  }
  0x13   :  { %s744_s23 = smov [#allocation2]   ;;  %s669_s27 = scalar_lea.hbm %s881_s3, 4096 }
  0x14   :  { %s28_s24 = sshll.u32 %s744_s23, 4  ;;  %p670_p8 = scmp.ne.s32.totalorder %s881_s3, %s669_s27  ;;  %s29_s24 = int_to_ptr.vmem [resolvable:$true] %s28_s24 }
  0x15   :  { %p673_p9 = scmp.lt.u32.totalorder %s669_s27, %s881_s3 }
  0x17   :  { %p675_p10 = pnand %p673_p9, %p670_p8 }
  0x19   :  { %678 = shalt.err (!%p675_p10)
}
  0x1a   :  { %s679_s12 = scalar_lea.vmem %s29_s24, 4096  ;;  %p684_p12 = scmp.lt.s32.totalorder %s29_s24, %s29_s24 }
  0x1b   :  { %p680_p11 = scmp.ne.s32.totalorder %s29_s24, %s679_s12  ;;  %p685_p13 = scmp.lt.s32.totalorder %s679_s12, %s679_s12 }
  0x1d   :  { %p686_p0 = por %p685_p13, %p684_p12 }
  0x1f   :  { %p687_p1 = pnand %p686_p0, %p680_p11 }
  0x21   :  { %690 = shalt.err (!%p687_p1)
}
  0x22   :  { %s745_s5 = smov 256   ;;  %s746_s10 = smov 16  }
  0x23   :  { %34 = dma.hbm_to_vmem [thread:$0]  %s881_s3, 4096, %s29_s24, [#allocation3], %s745_s5, %s745_s5, %s746_s10  }
  0x24   :  { %s747_s15 = smov [#allocation7]   ;;  %s691_s21 = scalar_lea.hbm %s885_s7, 2048 }
  0x25   :  { %s56_s16 = sshll.u32 %s747_s15, 4  ;;  %p692_p2 = scmp.ne.s32.totalorder %s885_s7, %s691_s21  ;;  %s57_s16 = int_to_ptr.vmem [resolvable:$true] %s56_s16 }
  0x26   :  { %p695_p3 = scmp.lt.u32.totalorder %s691_s21, %s885_s7 }
  0x28   :  { %p697_p4 = pnand %p695_p3, %p692_p2 }
  0x2a   :  { %700 = shalt.err (!%p697_p4)
}
  0x2b   :  { %s701_s27 = scalar_lea.vmem %s57_s16, 2048  ;;  %p706_p6 = scmp.lt.s32.totalorder %s57_s16, %s57_s16 }
  0x2c   :  { %p702_p5 = scmp.ne.s32.totalorder %s57_s16, %s701_s27  ;;  %p707_p7 = scmp.lt.s32.totalorder %s701_s27, %s701_s27 }
  0x2e   :  { %p708_p8 = por %p707_p7, %p706_p6 }
  0x30   :  { %p709_p9 = pnand %p708_p8, %p702_p5 }
  0x32   :  { %712 = shalt.err (!%p709_p9)
}
  0x33   :  { %62 = dma.hbm_to_vmem [thread:$0]  %s885_s7, 2048, %s57_s16, [#allocation6], %s742_s19, %s742_s19, %s743_s20  }
  0x34   :  { %735 = dma.done.wait [#allocation3], 4096  }
  0x35   :  { %736 = vsyncadd [#allocation3], 4294963200 }
  0x36   :  { %737 = dma.done.wait [#allocation6], 6144  }
  0x37   :  { %738 = vsyncadd [#allocation6], 4294961152  ;;  %v748_v0 = vmov 0   ;;  %v74_v1 = vld [vmem:[%s878_s0] sm:$0xff]  ;;  %v108_v3 = vld [vmem:[#allocation2 + $0x18] sm:$0xff]  ;;  %v749_v16 = vmov 1  }
  0x38   :  { %641 = vset.pattern.permute.xlu0 %v748_v0  ;;  %v106_v2 = vld [vmem:[#allocation2 + $0x8] sm:$0xff]  ;;  %v105_v5 = vld [vmem:[#allocation2] sm:$0xff]  ;;  %v107_v6 = vld [vmem:[#allocation2 + $0x10] sm:$0xff]  ;;  %v750_v30 = vmov 0.0   ;;  %vm752_vm0 = vmmov 0   ;;  %s753_s5 = smov [#allocation8]  }
  0x39   :  { %79 = vperm.xlu0 %641, %v74_v1   ;;  %v540_v4 = vpack.c.bf16 %v108_v3, %v106_v2  ;;  %v110_v7 = vld [vmem:[#allocation2 + $0x28] sm:$0xff]  ;;  %v542_v8 = vpack.c.bf16 %v107_v6, %v105_v5  ;;  %v112_v9 = vld [vmem:[#allocation2 + $0x38] sm:$0xff]  ;;  %v109_v10 = vld [vmem:[#allocation2 + $0x20] sm:$0xff]  ;;  %213 = vmatprep.mubr.f32.mxu0 %v750_v30  ;;  %s439_s10 = sshll.u32 %s753_s5, 4  ;;  %s440_s10 = int_to_ptr.vmem [resolvable:$true] %s439_s10 }
  0x3a   :  { %v111_v11 = vld [vmem:[#allocation2 + $0x30] sm:$0xff]  ;;  %v544_v12 = vpack.c.bf16 %v112_v9, %v110_v7  ;;  %v114_v13 = vld [vmem:[#allocation2 + $0x48] sm:$0xff]  ;;  %v116_v14 = vld [vmem:[#allocation2 + $0x58] sm:$0xff]  ;;  %p718_p11 = scmp.lt.s32.totalorder %s440_s10, %s440_s10 }
  0x3b   :  { %541 = vmatprep.subr.bf16.mxu0 %v540_v4  ;;  %v546_v15 = vpack.c.bf16 %v111_v11, %v109_v10  ;;  %v548_v17 = vpack.c.bf16 %v116_v14, %v114_v13  ;;  %v113_v18 = vld [vmem:[#allocation2 + $0x40] sm:$0xff]  ;;  %v115_v19 = vld [vmem:[#allocation2 + $0x50] sm:$0xff]  ;;  %v118_v20 = vld [vmem:[#allocation2 + $0x68] sm:$0xff] }
  0x3c   :  { %543 = vmatpush1.bf16.msra.mxu0 %v542_v8  ;;  %v120_v21 = vld [vmem:[#allocation2 + $0x78] sm:$0xff]  ;;  %v550_v22 = vpack.c.bf16 %v115_v19, %v113_v18  ;;  %v117_v24 = vld [vmem:[#allocation2 + $0x60] sm:$0xff]  ;;  %v119_v25 = vld [vmem:[#allocation2 + $0x70] sm:$0xff] }
  0x3d   :  { %642 = vset.pattern.permute.xlu0 %v749_v16  ;;  %545 = vmatprep.subr.bf16.mxu0 %v544_v12  ;;  %v552_v23 = vpack.c.bf16 %v120_v21, %v118_v20  ;;  %v122_v26 = vld [vmem:[#allocation2 + $0x88] sm:$0xff]  ;;  %v124_v27 = vld [vmem:[#allocation2 + $0x98] sm:$0xff]  ;;  %v121_v28 = vld [vmem:[#allocation2 + $0x80] sm:$0xff]  ;;  %v554_v31 = vpack.c.bf16 %v119_v25, %v117_v24 }
  0x3e   :  { %95 = vperm.xlu0 %642, %v74_v1   ;;  %v123_v29 = vld [vmem:[#allocation2 + $0x90] sm:$0xff]  ;;  %v126_v32 = vld [vmem:[#allocation2 + $0xa8] sm:$0xff]  ;;  %v128_v33 = vld [vmem:[#allocation2 + $0xb8] sm:$0xff]  ;;  %v556_v37 = vpack.c.bf16 %v124_v27, %v122_v26  ;;  %v82_v27 = vlaneseq }
  0x3f   :  { %v238_v34 = vld [vmem:[#allocation5 + $0x80] sm:$0xff]  ;;  %v239_v35 = vld [vmem:[#allocation5 + $0x88] sm:$0xff]  ;;  %v240_v40 = vld [vmem:[#allocation5 + $0x90] sm:$0xff]  ;;  %v558_v48 = vpack.c.bf16 %v123_v29, %v121_v28  ;;  %v560_v52 = vpack.c.bf16 %v128_v33, %v126_v32 }
  0x40   :  { %547 = vmatpush1.bf16.msra.mxu0 %v546_v15  ;;  %v222_v36 = vld [vmem:[#allocation5] sm:$0xff]  ;;  %v572_v38 = vpack.c.bf16 %v239_v35, %v238_v34  ;;  %v223_v39 = vld [vmem:[#allocation5 + $0x8] sm:$0xff]  ;;  %v241_v41 = vld [vmem:[#allocation5 + $0x98] sm:$0xff]  ;;  %v83_v28 = vshrl.u32 %v82_v27, 7 }
  0x41   :  { %549 = vmatprep.subr.bf16.mxu0 %v548_v17  ;;  %v574_v42 = vpack.c.bf16 %v223_v39, %v222_v36  ;;  %v576_v43 = vpack.c.bf16 %v241_v41, %v240_v40  ;;  %v224_v44 = vld [vmem:[#allocation5 + $0x10] sm:$0xff]  ;;  %v225_v45 = vld [vmem:[#allocation5 + $0x18] sm:$0xff]  ;;  %v242_v46 = vld [vmem:[#allocation5 + $0xa0] sm:$0xff] }
  0x42   :  { %573 = vmatprep.subr.bf16.mxu1 %v572_v38  ;;  %v243_v47 = vld [vmem:[#allocation5 + $0xa8] sm:$0xff]  ;;  %v125_v49 = vld [vmem:[#allocation2 + $0xa0] sm:$0xff]  ;;  %v127_v50 = vld [vmem:[#allocation2 + $0xb0] sm:$0xff]  ;;  %v578_v51 = vpack.c.bf16 %v225_v45, %v224_v44  ;;  %v84_v29 = vsub.s32 0, %v83_v28  ;;  %v100_v33 = vsub.s32 1, %v83_v28 }
  0x43   :  { %575 = vmatpush3.bf16.msra.mxu1 %v574_v42  ;;  %v130_v53 = vld [vmem:[#allocation2 + $0xc8] sm:$0xff]  ;;  %v580_v54 = vpack.c.bf16 %v243_v47, %v242_v46  ;;  %v226_v55 = vld [vmem:[#allocation5 + $0x20] sm:$0xff]  ;;  %v132_v57 = vld [vmem:[#allocation2 + $0xd8] sm:$0xff]  ;;  %v562_v60 = vpack.c.bf16 %v127_v50, %v125_v49 }
  0x44   :  { %551 = vmatpush1.bf16.msra.mxu0 %v550_v22  ;;  %577 = vmatprep.subr.bf16.mxu1 %v576_v43  ;;  %v227_v56 = vld [vmem:[#allocation5 + $0x28] sm:$0xff]  ;;  %v244_v58 = vld [vmem:[#allocation5 + $0xb0] sm:$0xff]  ;;  %v245_v59 = vld [vmem:[#allocation5 + $0xb8] sm:$0xff]  ;;  %v564_v0 = vpack.c.bf16 %v132_v57, %v130_v53 }
  0x45   :  { %553 = vmatprep.subr.bf16.mxu0 %v552_v23  ;;  %v129_v61 = vld [vmem:[#allocation2 + $0xc0] sm:$0xff]  ;;  %v131_v62 = vld [vmem:[#allocation2 + $0xd0] sm:$0xff]  ;;  %v582_v63 = vpack.c.bf16 %v227_v56, %v226_v55  ;;  %v134_v1 = vld [vmem:[#allocation2 + $0xe8] sm:$0xff]  ;;  %v584_v2 = vpack.c.bf16 %v245_v59, %v244_v58  ;;  %v751_v55 = vmov 0.0|0.0  }
  0x46   :  { %v228_v3 = vld [vmem:[#allocation5 + $0x30] sm:$0xff]  ;;  %v229_v4 = vld [vmem:[#allocation5 + $0x38] sm:$0xff]  ;;  %v246_v6 = vld [vmem:[#allocation5 + $0xc0] sm:$0xff]  ;;  %v566_v8 = vpack.c.bf16 %v131_v62, %v129_v61 }
  0x47   :  { %579 = vmatpush3.bf16.msra.mxu1 %v578_v51  ;;  %v136_v5 = vld [vmem:[#allocation2 + $0xf8] sm:$0xff]  ;;  %v247_v7 = vld [vmem:[#allocation5 + $0xc8] sm:$0xff]  ;;  %v133_v9 = vld [vmem:[#allocation2 + $0xe0] sm:$0xff]  ;;  %v586_v10 = vpack.c.bf16 %v229_v4, %v228_v3 }
  0x48   :  { %555 = vmatpush1.bf16.msra.mxu0 %v554_v31  ;;  %581 = vmatprep.subr.bf16.mxu1 %v580_v54  ;;  %v568_v11 = vpack.c.bf16 %v136_v5, %v134_v1  ;;  %v135_v12 = vld [vmem:[#allocation2 + $0xf0] sm:$0xff]  ;;  %v588_v13 = vpack.c.bf16 %v247_v7, %v246_v6  ;;  %v230_v14 = vld [vmem:[#allocation5 + $0x40] sm:$0xff]  ;;  %v231_v15 = vld [vmem:[#allocation5 + $0x48] sm:$0xff] }
  0x49   :  { %557 = vmatprep.subr.bf16.mxu0 %v556_v37  ;;  %v248_v16 = vld [vmem:[#allocation5 + $0xd0] sm:$0xff]  ;;  %v249_v17 = vld [vmem:[#allocation5 + $0xd8] sm:$0xff]  ;;  %v570_v18 = vpack.c.bf16 %v135_v12, %v133_v9  ;;  %v590_v19 = vpack.c.bf16 %v231_v15, %v230_v14  ;;  %v250_v23 = vld [vmem:[#allocation5 + $0xe0] sm:$0xff] }
  0x4a   :  { %v592_v20 = vpack.c.bf16 %v249_v17, %v248_v16  ;;  %v232_v21 = vld [vmem:[#allocation5 + $0x50] sm:$0xff]  ;;  %v233_v22 = vld [vmem:[#allocation5 + $0x58] sm:$0xff]  ;;  %v251_v24 = vld [vmem:[#allocation5 + $0xe8] sm:$0xff] }
  0x4b   :  { %583 = vmatpush3.bf16.msra.mxu1 %v582_v63  ;;  %v594_v25 = vpack.c.bf16 %v233_v22, %v232_v21  ;;  %v596_v26 = vpack.c.bf16 %v251_v24, %v250_v23  ;;  %v76_v31 = vld [vmem:[%s879_s1] sm:$0x3]  ;;  %v234_v43 = vld [vmem:[#allocation5 + $0x60] sm:$0xff]  ;;  %v252_v46 = vld [vmem:[#allocation5 + $0xf0] sm:$0xff] }
  0x4c   :  { %559 = vmatpush1.bf16.msra.mxu0 %v558_v48  ;;  %585 = vmatprep.subr.bf16.mxu1 %v584_v2  ;;  %v85_v32 = vrot.slane %v76_v31, %v84_v29  ;;  %v101_v36 = vrot.slane %v76_v31, %v100_v33  ;;  %v449_v37 = vld [vmem:[%s880_s2] ss:$0 sm:$0xff]  ;;  %v253_v47 = vld [vmem:[#allocation5 + $0xf8] sm:$0xff]  ;;  %v236_v49 = vld [vmem:[#allocation5 + $0x70] sm:$0xff] }
  0x4d   :  { %561 = vmatprep.subr.bf16.mxu0 %v560_v52  ;;  %v235_v44 = vld [vmem:[#allocation5 + $0x68] sm:$0xff]  ;;  %v600_v48 = vpack.c.bf16 %v253_v47, %v252_v46  ;;  %v237_v50 = vld [vmem:[#allocation5 + $0x78] sm:$0xff]  ;;  %v332_v52 = vld [vmem:[#allocation7] sm:$0xff] }
  0x4e   :  { %v598_v45 = vpack.c.bf16 %v235_v44, %v234_v43  ;;  %v602_v51 = vpack.c.bf16 %v237_v50, %v236_v49  ;;  %v333_v53 = vld [vmem:[#allocation7 + $0x8] sm:$0xff]  ;;  %v334_v54 = vld [vmem:[#allocation7 + $0x10] sm:$0xff]  ;;  %v335_v57 = vld [vmem:[#allocation7 + $0x18] sm:$0xff] }
  0x4f   :  { %587 = vmatpush3.bf16.msra.mxu1 %v586_v10  ;;  %v605_v56 = vpack.c.bf16 %v333_v53, %v332_v52  ;;  %v608_v58 = vpack.c.bf16 %v335_v57, %v334_v54  ;;  %v336_v59 = vld [vmem:[#allocation7 + $0x20] sm:$0xff]  ;;  %v338_v62 = vld [vmem:[#allocation7 + $0x30] sm:$0xff]  ;;  %v339_v63 = vld [vmem:[#allocation7 + $0x38] sm:$0xff] }
  0x50   :  { %563 = vmatpush1.bf16.msra.mxu0 %v562_v60  ;;  %589 = vmatprep.subr.bf16.mxu1 %v588_v13  ;;  %v337_v60 = vld [vmem:[#allocation7 + $0x28] sm:$0xff]  ;;  %v340_v1 = vld [vmem:[#allocation7 + $0x40] sm:$0xff]  ;;  %v342_v4 = vld [vmem:[#allocation7 + $0x50] sm:$0xff] }
  0x51   :  { %565 = vmatprep.subr.bf16.mxu0 %v564_v0  ;;  %v611_v61 = vpack.c.bf16 %v337_v60, %v336_v59  ;;  %v614_v0 = vpack.c.bf16 %v339_v63, %v338_v62  ;;  %v341_v2 = vld [vmem:[#allocation7 + $0x48] sm:$0xff]  ;;  %v343_v5 = vld [vmem:[#allocation7 + $0x58] sm:$0xff]  ;;  %v344_v16 = vld [vmem:[#allocation7 + $0x60] sm:$0xff] }
  0x52   :  { %v617_v3 = vpack.c.bf16 %v341_v2, %v340_v1  ;;  %v620_v6 = vpack.c.bf16 %v343_v5, %v342_v4  ;;  %v137_v7 = vld [vmem:[%s882_s4] sm:$0x3] }
  0x53   :  { %591 = vmatpush3.bf16.msra.mxu1 %v590_v19  ;;  %v146_v9 = vrot.slane %v137_v7, %v100_v33  ;;  %v345_v17 = vld [vmem:[#allocation7 + $0x68] sm:$0xff]  ;;  %v346_v19 = vld [vmem:[#allocation7 + $0x70] sm:$0xff] }
  0x54   :  { %567 = vmatpush1.bf16.msra.mxu0 %v566_v8  ;;  %593 = vmatprep.subr.bf16.mxu1 %v592_v20  ;;  %v142_v8 = vrot.slane %v137_v7, %v84_v29  ;;  %v347_v20 = vld [vmem:[#allocation7 + $0x78] sm:$0xff]  ;;  %v450_v23 = vld [vmem:[%s884_s6] ss:$0 sm:$0xff]  ;;  %s713_s6 = scalar_lea.vmem %s440_s10, 128 }
  0x55   :  { %569 = vmatprep.subr.bf16.mxu0 %v568_v11  ;;  %v626_v21 = vpack.c.bf16 %v347_v20, %v346_v19  ;;  %v451_v28 = vld [vmem:[%s886_s8] ss:$0 sm:$0xff]  ;;  %p714_p10 = scmp.ne.s32.totalorder %s440_s10, %s713_s6  ;;  %p719_p12 = scmp.lt.s32.totalorder %s713_s6, %s713_s6 }
  0x57   :  { %595 = vmatpush3.bf16.msra.mxu1 %v594_v25  ;;  %p720_p13 = por %p719_p12, %p718_p11 }
  0x58   :  { %571 = vmatpush1.bf16.msra.mxu0 %v570_v18  ;;  %597 = vmatprep.subr.bf16.mxu1 %v596_v26  ;;  %v623_v18 = vpack.c.bf16 %v345_v17, %v344_v16 }
  0x59   :  { %604 = vmatprep.subr.bf16.mxu0 %v751_v55  ;;  %p721_p0 = pnand %p720_p13, %p714_p10 }
  0x5b   :  { %599 = vmatpush3.bf16.msra.mxu1 %v598_v45 }
  0x5c   :  { %601 = vmatprep.subr.bf16.mxu1 %v600_v48 }
  0x5f   :  { %603 = vmatpush3.bf16.msra.mxu1 %v602_v51 }
  0xb8   :  { %v80_v34 = vpop.permute.xlu0 %79 }
  0xb9   :  { %v86_v35 = vmul.f32 %v85_v32, %v80_v34 }
  0xbb   :  { %v93_v39 = vadd.f32 %v449_v37, %v86_v35 }
  0xbd   :  { %v96_v38 = vpop.permute.xlu0 %95 }
  0xbe   :  { %v102_v40 = vmul.f32 %v101_v36, %v96_v38 }
  0xc0   :  { %v103_v41 = vadd.f32 %v102_v40, %v93_v39 }
  0xc2   :  { %v104_v42 = vmax.f32 %v103_v41, 0.0 }
  0xc4   :  { %214 = vmatmul.mubr.f32.vlgmr.msra.gmra.mrb[0].mxu0 %v104_v42 }
  0xc5   :  { %606 = vmatpush3.bf16.msra.mxu0 %v605_v56  ;;  %537 = vmatprep.mubr.msk.f32.mxu0 %vm752_vm0, %v750_v30 }
  0xc6   :  { %607 = vmatprep.subr.bf16.mxu0 %v751_v55 }
  0xc9   :  { %609 = vmatpush3.bf16.msra.mxu0 %v608_v58 }
  0xca   :  { %610 = vmatprep.subr.bf16.mxu0 %v751_v55 }
  0xcd   :  { %612 = vmatpush3.bf16.msra.mxu0 %v611_v61 }
  0xce   :  { %613 = vmatprep.subr.bf16.mxu0 %v751_v55 }
  0xd1   :  { %615 = vmatpush3.bf16.msra.mxu0 %v614_v0 }
  0xd2   :  { %616 = vmatprep.subr.bf16.mxu0 %v751_v55 }
  0xd5   :  { %618 = vmatpush3.bf16.msra.mxu0 %v617_v3 }
  0xd6   :  { %619 = vmatprep.subr.bf16.mxu0 %v751_v55 }
  0xd9   :  { %621 = vmatpush3.bf16.msra.mxu0 %v620_v6 }
  0xda   :  { %622 = vmatprep.subr.bf16.mxu0 %v751_v55 }
  0xdd   :  { %624 = vmatpush3.bf16.msra.mxu0 %v623_v18 }
  0xde   :  { %625 = vmatprep.subr.bf16.mxu0 %v751_v55 }
  0xe1   :  { %627 = vmatpush3.bf16.msra.mxu0 %v626_v21 }
 0x197   :  { %v215_v10 = vpop.f32.mrb[0].mxu0 }
 0x198   :  { %v216_v11 = vadd.f32 %v215_v10, %v142_v8  ;;  %v217_v12 = vpop.f32.mrb[1].mxu0 }
 0x199   :  { %v218_v13 = vadd.f32 %v217_v12, %v146_v9 }
 0x19a   :  { %v220_v15 = vmax.f32 %v216_v11, 0.0 }
 0x19b   :  { %v221_v14 = vmax.f32 %v218_v13, 0.0 }
 0x19d   :  { %325 = vmatprep.mubr.f32.mxu1 %v221_v14 }
 0x19e   :  { %326 = vmatmul.mubr.f32.vlgmr.msra.gmra.mrb[0].mxu1 %v220_v15 }
 0x271   :  { %v485_v22 = vpop.f32.mrb[0].mxu1 }
 0x272   :  { %v486_v24 = vpop.f32.mrb[1].mxu1 }
 0x273   :  { %v487_v25 = vadd.f32 %v486_v24, %v485_v22 }
 0x275   :  { %v328_v26 = vadd.f32 %v487_v25, %v450_v23 }
 0x277   :  { %v331_v27 = vmax.f32 %v328_v26, 0.0 }
 0x279   :  { %538 = vmatmul.mubr.f32.vlgmr.msra.gmra.mrb[2].mxu0 %v331_v27 }
 0x34c   :  { %v421_v29 = vpop.f32.mrb[2].mxu0 }
 0x34d   :  { %v422_v31 = vadd.f32 %v451_v28, %v421_v29  ;;  %v539_v32 = vpop.f32.mrb[3].mxu0 }
 0x34f   :  { %v452_v33 = vmul.f32 -1.442695, %v422_v31 }
 0x351   :  { %643 = vpow2.f32 %v452_v33 }
 0x35b   :  { %v644_v30 = vpop.eup %643 }
 0x35c   :  { %v428_v34 = vadd.f32 1.0, %v644_v30 }
 0x35e   :  { %645 = vrcp.f32 %v428_v34 }
 0x368   :  { %v646_v35 = vpop.eup %645 }
 0x369   :  { %v431_v36 = vmul.f32 2.0, %v646_v35 }
 0x36b   :  { %432 = vst [vmem:[#allocation8] sm:$0xff] %v431_v36 }
 0x36c   :  { %724 = shalt.err (!%p721_p0)
}
 0x36d   :  { %s725_s14 = scalar_lea.hbm %s887_s9, 128 }
 0x36e   :  { %p726_p1 = scmp.ne.s32.totalorder %s887_s9, %s725_s14  ;;  %p729_p2 = scmp.lt.u32.totalorder %s725_s14, %s887_s9 }
 0x370   :  { %p731_p3 = pnand %p729_p2, %p726_p1 }
 0x372   :  { %734 = shalt.err (!%p731_p3)
}
 0x373   :  { %442 = dma.vmem_to_hbm [thread:$0]  %s440_s10, 128, %s887_s9, [#allocation4]  }
 0x374   :  { %739 = dma.done.wait [#allocation4], 128  }
 0x375   :  { %740 = vsyncadd [#allocation4], 4294967168 }
 0x376   :  { %446 = vsyncpa [#allocation3], 1 }
 0x377   :  { %447 = vsyncpa [#allocation6], 1 }
 0x378   :  { %448 = vsyncpa [#allocation4], 1 }

</bundles_post_ra>
